<compile_context>
chip_gen: v5e
topology: v5e:2x2
jax: 0.10.0
libtpu: 0.0.40
codegen_flags: <defaults>
</compile_context>

<pallas_src>
import functools

import jax
import jax.numpy as jnp
from jax import lax
from jax.experimental import pallas as pl
from jax.experimental.pallas import tpu as pltpu

LANE = 128                       # lane width: channel dims padded to multiples of this
_VMEM_LIMIT = 64 * 1024 * 1024   # scoped-VMEM limit (<= physical on v5e/v6e/v7x)


def _round_up(x, m):
    return (x + m - 1) // m * m


def _pick_tile(m):
    """Largest row tile from a preferred list that divides m (else full extent)."""
    for t in (1024, 512, 256, 128, 64, 32, 16):
        if m % t == 0:
            return t
    return m


# ---------------------------------------------------------------------------
# Pallas kernels
# ---------------------------------------------------------------------------
def _mm_in_affine_stats_kernel(x_ref, sc_ref, sh_ref, w_ref, y_ref, s_ref, ss_ref,
                               *, relu_in):
    """1x1 conv tile:  y = (relu?(x*sc+sh)) @ w  (bf16 MXU, f32 acc) + BN partials."""
    h = x_ref[...].astype(jnp.float32) * sc_ref[...] + sh_ref[...]   # producer BN affine
    if relu_in:
        h = jnp.maximum(h, 0.0)
    y = jnp.dot(h.astype(jnp.bfloat16), w_ref[...],
                preferred_element_type=jnp.float32)
    y_ref[...] = y.astype(y_ref.dtype)
    # per-tile partial BN statistics (f32), reduced outside the kernel
    s_ref[...] = jnp.sum(y, axis=0, keepdims=True).reshape(s_ref.shape)
    ss_ref[...] = jnp.sum(y * y, axis=0, keepdims=True).reshape(ss_ref.shape)


def _conv3x3_in_affine_stats_kernel(y1_ref, sc_ref, sh_ref, w_ref,
                                    y2_ref, s_ref, ss_ref, pad_ref, *, stride):
    """3x3 conv for one image: fused BN1+ReLU on the input, in-kernel zero pad,
    9 accumulating shifted-window MXU dots (no im2col), + BN2 partial stats."""
    H, W, C = y1_ref.shape[1], y1_ref.shape[2], y1_ref.shape[3]
    Ho, Wo, Cout = y2_ref.shape[1], y2_ref.shape[2], y2_ref.shape[3]

    # BN1 affine + ReLU applied on the fly (f32 VPU math), written into the
    # center of a zero-initialized padded VMEM scratch tile.
    h = y1_ref[0].astype(jnp.float32) * sc_ref[...] + sh_ref[...]
    h = jnp.maximum(h, 0.0)
    pad_ref[...] = jnp.zeros_like(pad_ref)
    pad_ref[1:H + 1, 1:W + 1, :] = h

    acc = jnp.zeros((Ho * Wo, Cout), jnp.float32)
    for dh in range(3):
        for dw in range(3):
            if stride == 1:
                tap = pad_ref[dh:dh + Ho, dw:dw + Wo, :]
            else:
                tap = pad_ref[pl.ds(dh, Ho, stride=stride),
                              pl.ds(dw, Wo, stride=stride), :]
            acc = acc + jnp.dot(tap.reshape(Ho * Wo, C).astype(jnp.bfloat16),
                                w_ref[dh * 3 + dw],
                                preferred_element_type=jnp.float32)

    y2_ref[...] = acc.reshape(1, Ho, Wo, Cout).astype(y2_ref.dtype)
    s_ref[...] = jnp.sum(acc, axis=0, keepdims=True).reshape(s_ref.shape)
    ss_ref[...] = jnp.sum(acc * acc, axis=0, keepdims=True).reshape(ss_ref.shape)


def _shortcut_bn_add_relu_kernel(xs_ref, ws_ref, bs_ref, y3_ref, sc_ref, sh_ref, o_ref):
    """Shortcut 1x1 conv fused with the final BN3 + residual add + ReLU."""
    r = jnp.dot(xs_ref[...].astype(jnp.bfloat16), ws_ref[...],
                preferred_element_type=jnp.float32) + bs_ref[...]
    h3 = y3_ref[...].astype(jnp.float32) * sc_ref[...] + sh_ref[...]
    o_ref[...] = jnp.maximum(h3 + r, 0.0).astype(o_ref.dtype)


# ---------------------------------------------------------------------------
# Pallas wrappers
# ---------------------------------------------------------------------------
def conv1x1_bn_in_stats(x, w, in_scale, in_shift, *, relu_in):
    M, K = x.shape
    C = w.shape[1]
    tm = _pick_tile(M)
    nt = M // tm
    kernel = functools.partial(_mm_in_affine_stats_kernel, relu_in=relu_in)
    y, s, ss = pl.pallas_call(
        kernel,
        out_shape=(
            jax.ShapeDtypeStruct((M, C), jnp.bfloat16),
            jax.ShapeDtypeStruct((nt, 1, C), jnp.float32),
            jax.ShapeDtypeStruct((nt, 1, C), jnp.float32),
        ),
        grid_spec=pltpu.PrefetchScalarGridSpec(
            num_scalar_prefetch=0,
            grid=(nt,),
            in_specs=[
                pl.BlockSpec((tm, K), lambda i: (i, 0)),
                pl.BlockSpec((1, K), lambda i: (0, 0)),
                pl.BlockSpec((1, K), lambda i: (0, 0)),
                pl.BlockSpec((K, C), lambda i: (0, 0)),
            ],
            out_specs=[
                pl.BlockSpec((tm, C), lambda i: (i, 0)),
                pl.BlockSpec((1, 1, C), lambda i: (i, 0, 0)),
                pl.BlockSpec((1, 1, C), lambda i: (i, 0, 0)),
            ],
        ),
        compiler_params=pltpu.CompilerParams(
            dimension_semantics=("parallel",),
            vmem_limit_bytes=_VMEM_LIMIT),
    )(x, in_scale, in_shift, w)
    return y, jnp.sum(s, axis=0), jnp.sum(ss, axis=0)      # stats: (1, C) f32


def conv3x3_bn_in_stats(y1_nhwc, in_scale, in_shift, w9, *, stride):
    N, H, W, C = y1_nhwc.shape
    Cout = w9.shape[-1]
    Ho = (H + 2 - 3) // stride + 1
    Wo = (W + 2 - 3) // stride + 1
    kernel = functools.partial(_conv3x3_in_affine_stats_kernel, stride=stride)
    y2, s, ss = pl.pallas_call(
        kernel,
        out_shape=(
            jax.ShapeDtypeStruct((N, Ho, Wo, Cout), jnp.bfloat16),
            jax.ShapeDtypeStruct((N, 1, Cout), jnp.float32),
            jax.ShapeDtypeStruct((N, 1, Cout), jnp.float32),
        ),
        grid_spec=pltpu.PrefetchScalarGridSpec(
            num_scalar_prefetch=0,
            grid=(N,),
            in_specs=[
                pl.BlockSpec((1, H, W, C), lambda n: (n, 0, 0, 0)),
                pl.BlockSpec((1, C), lambda n: (0, 0)),
                pl.BlockSpec((1, C), lambda n: (0, 0)),
                pl.BlockSpec((9, C, Cout), lambda n: (0, 0, 0)),
            ],
            out_specs=[
                pl.BlockSpec((1, Ho, Wo, Cout), lambda n: (n, 0, 0, 0)),
                pl.BlockSpec((1, 1, Cout), lambda n: (n, 0, 0)),
                pl.BlockSpec((1, 1, Cout), lambda n: (n, 0, 0)),
            ],
            scratch_shapes=[pltpu.VMEM((H + 2, W + 2, C), jnp.float32)],
        ),
        compiler_params=pltpu.CompilerParams(
            dimension_semantics=("parallel",),
            vmem_limit_bytes=_VMEM_LIMIT),
    )(y1_nhwc, in_scale, in_shift, w9)
    return y2, jnp.sum(s, axis=0), jnp.sum(ss, axis=0)


def shortcut_bn_add_relu(xs, ws, bs, y3, sc3, sh3):
    M, K = xs.shape
    C = ws.shape[1]
    tm = _pick_tile(M)
    return pl.pallas_call(
        _shortcut_bn_add_relu_kernel,
        out_shape=jax.ShapeDtypeStruct((M, C), jnp.float32),
        grid_spec=pltpu.PrefetchScalarGridSpec(
            num_scalar_prefetch=0,
            grid=(M // tm,),
            in_specs=[
                pl.BlockSpec((tm, K), lambda i: (i, 0)),
                pl.BlockSpec((K, C), lambda i: (0, 0)),
                pl.BlockSpec((1, C), lambda i: (0, 0)),
                pl.BlockSpec((tm, C), lambda i: (i, 0)),
                pl.BlockSpec((1, C), lambda i: (0, 0)),
                pl.BlockSpec((1, C), lambda i: (0, 0)),
            ],
            out_specs=pl.BlockSpec((tm, C), lambda i: (i, 0)),
        ),
        compiler_params=pltpu.CompilerParams(
            dimension_semantics=("parallel",),
            vmem_limit_bytes=_VMEM_LIMIT),
    )(xs, ws, bs, y3, sc3, sh3)


# ---------------------------------------------------------------------------
# JAX glue (layout / param padding / BN stat finalization — no heavy compute)
# ---------------------------------------------------------------------------
def bn_scale_shift(s, ss, m, gamma, beta, eps=1e-5):
    mean = s / m
    var = jnp.maximum(ss / m - mean * mean, 0.0)     # biased var; clamp cancellation
    scale = gamma * lax.rsqrt(var + eps)
    shift = beta - mean * scale
    return scale, shift                               # both (1, C) f32


def residual_block_forward_nhwc(x_nhwc, params, downsample=False):
    """NHWC entry point — use this when chaining blocks (no per-block transposes)."""
    N, H, W, Cin = x_nhwc.shape
    stride = 2 if downsample else 1
    mid = params["w1"].shape[1]
    cout = params["w3"].shape[1]
    cin_p, mid_p, cout_p = (_round_up(c, LANE) for c in (Cin, mid, cout))

    # ---- lane-dense, bf16 weights; f32 per-channel affine vectors -----------
    def padw(w, kp, cp):
        return jnp.pad(w, ((0, kp - w.shape[0]), (0, cp - w.shape[1]))).astype(jnp.bfloat16)

    def padvec(v, cp):
        v = v.reshape(-1)
        return jnp.pad(v, (0, cp - v.shape[0])).reshape(1, cp).astype(jnp.float32)

    w1 = padw(params["w1"], cin_p, mid_p)
    w3 = padw(params["w3"], mid_p, cout_p)
    ws = padw(params["ws"], cin_p, cout_p)
    w2 = params["w2"].reshape(9, mid, mid)
    w2 = jnp.pad(w2, ((0, 0), (0, mid_p - mid), (0, mid_p - mid))).astype(jnp.bfloat16)

    g1, be1 = padvec(params["g1"], mid_p), padvec(params["beta1"], mid_p)
    g2, be2 = padvec(params["g2"], mid_p), padvec(params["beta2"], mid_p)
    g3, be3 = padvec(params["g3"], cout_p), padvec(params["beta3"], cout_p)
    bs = padvec(params["bs"], cout_p)
    ones_in = jnp.ones((1, cin_p), jnp.float32)
    zeros_in = jnp.zeros((1, cin_p), jnp.float32)

    xp = jnp.pad(x_nhwc, ((0, 0), (0, 0), (0, 0), (0, cin_p - Cin)))
    M = N * H * W

    # conv1 (1x1; bias dropped — train-mode BN cancels it) + BN1 partial stats
    y1, s1, ss1 = conv1x1_bn_in_stats(xp.reshape(M, cin_p), w1,
                                      ones_in, zeros_in, relu_in=False)
    sc1, sh1 = bn_scale_shift(s1, ss1, M, g1, be1)

    # conv2 (3x3, stride) with BN1+ReLU fused on its input, + BN2 partial stats
    y2, s2, ss2 = conv3x3_bn_in_stats(y1.reshape(N, H, W, mid_p), sc1, sh1, w2,
                                      stride=stride)
    Ho, Wo = y2.shape[1], y2.shape[2]
    M2 = N * Ho * Wo
    sc2, sh2 = bn_scale_shift(s2, ss2, M2, g2, be2)

    # conv3 (1x1) with BN2+ReLU fused on its input, + BN3 partial stats
    y3, s3, ss3 = conv1x1_bn_in_stats(y2.reshape(M2, mid_p), w3, sc2, sh2, relu_in=True)
    sc3, sh3 = bn_scale_shift(s3, ss3, M2, g3, be3)

    # shortcut 1x1 conv (strided) fused with BN3 + residual add + final ReLU
    xs = xp[:, ::stride, ::stride, :] if downsample else xp
    out = shortcut_bn_add_relu(xs.reshape(M2, cin_p), ws, bs, y3, sc3, sh3)
    return out[:, :cout].reshape(N, Ho, Wo, cout)


def residual_block_forward(x_nchw, params, downsample=False):
    # NCHW <-> NHWC transposes only at the block boundary (PyTorch-compatible API).
    x = jnp.transpose(x_nchw, (0, 2, 3, 1))
    out = residual_block_forward_nhwc(x, params, downsample=downsample)
    return jnp.transpose(out, (0, 3, 1, 2))


# ---------------------------------------------------------------------------
# Deterministic parameter init (matmul layout: (K, Cout))
# ---------------------------------------------------------------------------
def init_params(key, in_channels, out_channel):
    mid = out_channel // 4
    k = jax.random.split(key, 8)

    def conv_w(kk, cin_eff, cout):
        return jax.random.normal(kk, (cin_eff, cout), jnp.float32) / jnp.sqrt(
            jnp.float32(cin_eff))

    return dict(
        w1=conv_w(k[0], in_channels, mid),
        b1=jax.random.normal(k[1], (mid,), jnp.float32) * 0.1,
        g1=jnp.ones((1, mid), jnp.float32), beta1=jnp.zeros((1, mid), jnp.float32),
        w2=conv_w(k[2], 9 * mid, mid),
        b2=jax.random.normal(k[3], (mid,), jnp.float32) * 0.1,
        g2=jnp.ones((1, mid), jnp.float32), beta2=jnp.zeros((1, mid), jnp.float32),
        w3=conv_w(k[4], mid, out_channel),
        b3=jax.random.normal(k[5], (out_channel,), jnp.float32) * 0.1,
        g3=jnp.ones((1, out_channel), jnp.float32),
        beta3=jnp.zeros((1, out_channel), jnp.float32),
        ws=conv_w(k[6], in_channels, out_channel),
        bs=jax.random.normal(k[7], (out_channel,), jnp.float32) * 0.1,
    )


# ---------------------------------------------------------------------------
# Pure-JAX f32 reference (lax.conv based, with conv biases) for correctness
# ---------------------------------------------------------------------------
def reference_forward(x, p, downsample=False):
    stride = 2 if downsample else 1

    def conv(x, w2d, b, khw, s, pad):
        kh, kw = khw
        cout = w2d.shape[1]
        cin = w2d.shape[0] // (kh * kw)
        w = w2d.reshape(kh, kw, cin, cout)
        y = lax.conv_general_dilated(x, w, (s, s), pad,
                                     dimension_numbers=("NCHW", "HWIO", "NCHW"))
        return y + b.reshape(1, -1, 1, 1)

    def bn(y, g, beta, eps=1e-5):
        mean = y.mean(axis=(0, 2, 3), keepdims=True)
        var = ((y - mean) ** 2).mean(axis=(0, 2, 3), keepdims=True)
        return (y - mean) / jnp.sqrt(var + eps) * g.reshape(1, -1, 1, 1) \
            + beta.reshape(1, -1, 1, 1)

    h = jax.nn.relu(bn(conv(x, p["w1"], p["b1"], (1, 1), 1, "VALID"),
                       p["g1"], p["beta1"]))
    h = jax.nn.relu(bn(conv(h, p["w2"], p["b2"], (3, 3), stride,
                            [(1, 1), (1, 1)]), p["g2"], p["beta2"]))
    h = bn(conv(h, p["w3"], p["b3"], (1, 1), 1, "VALID"), p["g3"], p["beta3"])
    r = conv(x, p["ws"], p["bs"], (1, 1), stride, "VALID")
    return jax.nn.relu(h + r)


if __name__ == "__main__":
    key = jax.random.PRNGKey(0)
    kx, kp = jax.random.split(key)

    N, Cin, H, W = 2, 16, 16, 16
    out_channel = 32
    downsample = False

    x = jax.random.normal(kx, (N, Cin, H, W), jnp.float32)
    params = init_params(kp, Cin, out_channel)

    out = residual_block_forward(x, params, downsample=downsample)
    out = jax.block_until_ready(out)
    assert out.shape == (N, out_channel, H, W), out.shape

    ref = jax.block_until_ready(reference_forward(x, params, downsample=downsample))
    # bf16 MXU inputs (f32 accumulation) across three chained conv+BN layers:
    # compare against the f32 reference with bf16-appropriate tolerances.
    max_err = float(jnp.max(jnp.abs(out - ref)))
    mean_err = float(jnp.mean(jnp.abs(out - ref)))
    assert max_err < 1e-1 and mean_err < 2e-2, (max_err, mean_err)

    print("KERNEL_OK")
</pallas_src>

<mosaic_0001>
module attributes {stable_mosaic.version = 11 : i64} {
  func.func @_mm_in_affine_stats_kernel(%arg0: i32, %arg1: memref<512x128xf32, #tpu.memory_space<vmem>>, %arg2: memref<1x128xf32, #tpu.memory_space<vmem>>, %arg3: memref<1x128xf32, #tpu.memory_space<vmem>>, %arg4: memref<128x128xbf16, #tpu.memory_space<vmem>>, %arg5: memref<512x128xbf16, #tpu.memory_space<vmem>>, %arg6: memref<1x1x128xf32, #tpu.memory_space<vmem>>, %arg7: memref<1x1x128xf32, #tpu.memory_space<vmem>>) attributes {dimension_semantics = [#tpu.dimension_semantics<parallel>], iteration_bounds = array<i64: 1>, scalar_prefetch = 0 : i64, scratch_operands = 0 : i64, tpu.core_type = #tpu.core_type<tc>, window_params = [{transform_indices = @transform_0, window_bounds = array<i64: 512, 128>}, {pipeline_mode = #tpu.pipeline_mode<synchronous>, transform_indices = @transform_1, window_bounds = array<i64: 1, 128>}, {pipeline_mode = #tpu.pipeline_mode<synchronous>, transform_indices = @transform_2, window_bounds = array<i64: 1, 128>}, {pipeline_mode = #tpu.pipeline_mode<synchronous>, transform_indices = @transform_3, window_bounds = array<i64: 128, 128>}, {transform_indices = @transform_4, window_bounds = array<i64: 512, 128>}, {transform_indices = @transform_5, window_bounds = array<i64: 1, 1, 128>}, {transform_indices = @transform_6, window_bounds = array<i64: 1, 1, 128>}]} {
    %c0 = arith.constant 0 : index
    %c0_0 = arith.constant 0 : index
    %0 = vector.load %arg1[%c0, %c0_0] : memref<512x128xf32, #tpu.memory_space<vmem>>, vector<512x128xf32>
    %c0_1 = arith.constant 0 : index
    %c0_2 = arith.constant 0 : index
    %1 = vector.load %arg2[%c0_1, %c0_2] : memref<1x128xf32, #tpu.memory_space<vmem>>, vector<1x128xf32>
    %2 = vector.broadcast %1 : vector<1x128xf32> to vector<512x128xf32>
    %3 = arith.mulf %0, %2 : vector<512x128xf32>
    %c0_3 = arith.constant 0 : index
    %c0_4 = arith.constant 0 : index
    %4 = vector.load %arg3[%c0_3, %c0_4] : memref<1x128xf32, #tpu.memory_space<vmem>>, vector<1x128xf32>
    %5 = vector.broadcast %4 : vector<1x128xf32> to vector<512x128xf32>
    %6 = arith.addf %3, %5 : vector<512x128xf32>
    %7 = arith.truncf %6 : vector<512x128xf32> to vector<512x128xbf16>
    %c0_5 = arith.constant 0 : index
    %c0_6 = arith.constant 0 : index
    %8 = vector.load %arg4[%c0_5, %c0_6] : memref<128x128xbf16, #tpu.memory_space<vmem>>, vector<128x128xbf16>
    %cst = arith.constant dense<0.000000e+00> : vector<512x128xf32>
    %9 = tpu.matmul %7, %8, %cst {dimension_numbers = #tpu.dot_dimension_numbers<[1], [0], [0], [1], [0, 0, 1, 1], [], []>} : vector<512x128xbf16>, vector<128x128xbf16>, vector<512x128xf32> -> vector<512x128xf32>
    %10 = arith.truncf %9 : vector<512x128xf32> to vector<512x128xbf16>
    %c0_7 = arith.constant 0 : index
    %c0_8 = arith.constant 0 : index
    %11 = vector.load %arg5[%c0_7, %c0_8] : memref<512x128xbf16, #tpu.memory_space<vmem>>, vector<512x128xbf16>
    tpu.vector_store %arg5[%c0_7, %c0_8], %10 {strides = array<i32>} : memref<512x128xbf16, #tpu.memory_space<vmem>>, vector<512x128xbf16>,
    %cst_9 = arith.constant dense<0.000000e+00> : vector<128xf32>
    %12 = vector.multi_reduction <add>, %9, %cst_9 [0] : vector<512x128xf32> to vector<128xf32>
    %13 = vector.shape_cast %12 : vector<128xf32> to vector<1x128xf32>
    %14 = vector.shape_cast %13 : vector<1x128xf32> to vector<1x1x128xf32>
    %c0_10 = arith.constant 0 : index
    %c0_11 = arith.constant 0 : index
    %c0_12 = arith.constant 0 : index
    %15 = vector.load %arg6[%c0_10, %c0_11, %c0_12] : memref<1x1x128xf32, #tpu.memory_space<vmem>>, vector<1x1x128xf32>
    tpu.vector_store %arg6[%c0_10, %c0_11, %c0_12], %14 {strides = array<i32>} : memref<1x1x128xf32, #tpu.memory_space<vmem>>, vector<1x1x128xf32>,
    %16 = arith.mulf %9, %9 : vector<512x128xf32>
    %cst_13 = arith.constant dense<0.000000e+00> : vector<128xf32>
    %17 = vector.multi_reduction <add>, %16, %cst_13 [0] : vector<512x128xf32> to vector<128xf32>
    %18 = vector.shape_cast %17 : vector<128xf32> to vector<1x128xf32>
    %19 = vector.shape_cast %18 : vector<1x128xf32> to vector<1x1x128xf32>
    %c0_14 = arith.constant 0 : index
    %c0_15 = arith.constant 0 : index
    %c0_16 = arith.constant 0 : index
    %20 = vector.load %arg7[%c0_14, %c0_15, %c0_16] : memref<1x1x128xf32, #tpu.memory_space<vmem>>, vector<1x1x128xf32>
    tpu.vector_store %arg7[%c0_14, %c0_15, %c0_16], %19 {strides = array<i32>} : memref<1x1x128xf32, #tpu.memory_space<vmem>>, vector<1x1x128xf32>,
    return
  }
  func.func @transform_0(%arg0: i32) -> (i32, i32) {
    %c0_i32 = arith.constant 0 : i32
    %c0_i32_0 = arith.constant 0 : i32
    return %arg0, %c0_i32 : i32, i32
  }
  func.func @transform_1(%arg0: i32) -> (i32, i32) {
    %c0_i32 = arith.constant 0 : i32
    %c0_i32_0 = arith.constant 0 : i32
    %c0_i32_1 = arith.constant 0 : i32
    return %c0_i32, %c0_i32_0 : i32, i32
  }
  func.func @transform_2(%arg0: i32) -> (i32, i32) {
    %c0_i32 = arith.constant 0 : i32
    %c0_i32_0 = arith.constant 0 : i32
    %c0_i32_1 = arith.constant 0 : i32
    return %c0_i32, %c0_i32_0 : i32, i32
  }
  func.func @transform_3(%arg0: i32) -> (i32, i32) {
    %c0_i32 = arith.constant 0 : i32
    %c0_i32_0 = arith.constant 0 : i32
    %c0_i32_1 = arith.constant 0 : i32
    return %c0_i32, %c0_i32_0 : i32, i32
  }
  func.func @transform_4(%arg0: i32) -> (i32, i32) {
    %c0_i32 = arith.constant 0 : i32
    %c0_i32_0 = arith.constant 0 : i32
    return %arg0, %c0_i32 : i32, i32
  }
  func.func @transform_5(%arg0: i32) -> (i32, i32, i32) {
    %c0_i32 = arith.constant 0 : i32
    %c0_i32_0 = arith.constant 0 : i32
    %c0_i32_1 = arith.constant 0 : i32
    return %arg0, %c0_i32, %c0_i32_0 : i32, i32, i32
  }
  func.func @transform_6(%arg0: i32) -> (i32, i32, i32) {
    %c0_i32 = arith.constant 0 : i32
    %c0_i32_0 = arith.constant 0 : i32
    %c0_i32_1 = arith.constant 0 : i32
    return %arg0, %c0_i32, %c0_i32_0 : i32, i32, i32
  }
}

</mosaic_0001>

<bundles_post_ra>
// kernel: tpu_custom_call.1
= control target key start
LH: loop header
LB: loop body
LE: loop exit
PB: predicated region body
PF: predicated region fallthrough
CT: control target
= control target key end

     0   :  { %12 = vsyncpa [#allocation3], 0  ;;  %s1832_s0 = inlined_call_operand.hbm [shape: f32[512,128], index: 0, kind: input, shape index: {}]   ;;  %s1833_s1 = inlined_call_operand.hbm [shape: f32[1,128], index: 1, kind: input, shape index: {}]   ;;  %s1834_s2 = inlined_call_operand.vmem [shape: f32[1,128], index: 2, kind: input, shape index: {}]   ;;  %s1835_s3 = inlined_call_operand.hbm [shape: bf16[128,128], index: 3, kind: input, shape index: {}]   ;;  %s1836_s4 = inlined_call_operand.hbm [shape: bf16[512,128], index: 4, kind: output, shape index: {0}]   ;;  %s1837_s5 = inlined_call_operand.hbm [shape: f32[1,1,128], index: 5, kind: output, shape index: {1}]   ;;  %s1838_s6 = inlined_call_operand.hbm [shape: f32[1,1,128], index: 6, kind: output, shape index: {2}]  }
   0x1   :  { %13 = vsyncpa [#allocation6], 0 }
   0x2   :  { %14 = vsyncpa [#allocation4], 0  ;;  %s34_s23 = sshll.u32 %s1833_s1, 4  ;;  %s35_s23 = int_to_ptr.hbm [resolvable:$true] %s34_s23 }
   0x3   :  { %15 = vsyncpa [#allocation10], 0  ;;  %s1334_s24 = smov [#allocation5]   ;;  %s20_s28 = sshll.u32 %s1832_s0, 4  ;;  %s21_s28 = int_to_ptr.hbm [resolvable:$true] %s20_s28 }
   0x4   :  { %s36_s25 = sshll.u32 %s1334_s24, 4  ;;  %s1335_s29 = smov [#allocation2]   ;;  %s37_s25 = int_to_ptr.vmem [resolvable:$true] %s36_s25 }
   0x5   :  { %39 = dma.hbm_to_vmem [thread:$0]  %s35_s23, 16, %s37_s25, [#allocation6]  }
   0x6   :  { %s22_s30 = sshll.u32 %s1335_s29, 4  ;;  %s1336_s7 = smov 128   ;;  %s23_s30 = int_to_ptr.vmem [resolvable:$true] %s22_s30 }
   0x7   :  { %s1337_s8 = smov 8   ;;  %s46_s1 = sshll.u32 %s1835_s3, 4  ;;  %s47_s1 = int_to_ptr.hbm [resolvable:$true] %s46_s1 }
   0x8   :  { %28 = dma.hbm_to_vmem [thread:$0]  %s21_s28, 8192, %s23_s30, [#allocation3], %s1336_s7, %s1336_s7, %s1337_s8  }
   0x9   :  { %s1338_s11 = smov [#allocation7]   ;;  %s1339_s13 = smov 64  }
   0xa   :  { %s48_s12 = sshll.u32 %s1338_s11, 4  ;;  %s1340_s14 = smov 4   ;;  %s49_s12 = int_to_ptr.vmem [resolvable:$true] %s48_s12 }
   0xb   :  { %54 = dma.hbm_to_vmem [thread:$0]  %s47_s1, 1024, %s49_s12, [#allocation6], %s1339_s13, %s1339_s13, %s1340_s14  }
   0xc   :  { %1326 = dma.done.wait [#allocation3], 8192  }
   0xd   :  { %1327 = vsyncadd [#allocation3], 4294959104 }
   0xe   :  { %1328 = dma.done.wait [#allocation6], 1040  }
   0xf   :  { %1329 = vsyncadd [#allocation6], 4294966256  ;;  %v954_v0 = vld [vmem:[#allocation7 + $0x38] sm:$0xff]  ;;  %v953_v1 = vld [vmem:[#allocation7 + $0x30] sm:$0xff]  ;;  %s870_s18 = sshll.u32 %s1836_s4, 4  ;;  %s1342_s4 = smov [#allocation9]   ;;  %s871_s18 = int_to_ptr.hbm [resolvable:$true] %s870_s18 }
  0x10   :  { %363 = vmatpush.bf16.msra.mxu0 %v954_v0  ;;  %1146 = vmatpush.bf16.msra.mxu1 %v954_v0  ;;  %v952_v2 = vld [vmem:[#allocation7 + $0x28] sm:$0xff]  ;;  %v951_v3 = vld [vmem:[#allocation7 + $0x20] sm:$0xff]  ;;  %v950_v4 = vld [vmem:[#allocation7 + $0x18] sm:$0xff]  ;;  %s882_s19 = sshll.u32 %s1342_s4, 4  ;;  %s884_s22 = sshll.u32 %s1837_s5, 4  ;;  %s883_s19 = int_to_ptr.vmem [resolvable:$true] %s882_s19  ;;  %s885_s22 = int_to_ptr.hbm [resolvable:$true] %s884_s22 }
  0x11   :  { %1147 = vmatpush.bf16.msra.mxu2 %v954_v0  ;;  %1148 = vmatpush.bf16.msra.mxu3 %v954_v0  ;;  %v949_v5 = vld [vmem:[#allocation7 + $0x10] sm:$0xff]  ;;  %v67_v6 = vld [vmem:[#allocation2] sm:$0xff]  ;;  %v68_v8 = vld [vmem:[#allocation2 + $0x8] sm:$0xff]  ;;  %s1343_s23 = smov [#allocation11]   ;;  %s895_s27 = sshll.u32 %s1838_s6, 4  ;;  %s896_s27 = int_to_ptr.hbm [resolvable:$true] %s895_s27 }
  0x12   :  { %v1391_v7 = vld [vmem:[#allocation5] ss:$0 sm:$0xff]  ;;  %v84_v10 = vld [vmem:[#allocation2 + $0x88] sm:$0xff]  ;;  %v69_v24 = vld [vmem:[#allocation2 + $0x10] sm:$0xff]  ;;  %s893_s24 = sshll.u32 %s1343_s23, 4  ;;  %s894_s24 = int_to_ptr.vmem [resolvable:$true] %s893_s24 }
  0x13   :  { %v83_v9 = vld [vmem:[#allocation2 + $0x80] sm:$0xff]  ;;  %v135_v11 = vmul.f32 %v1391_v7, %v67_v6  ;;  %v136_v12 = vmul.f32 %v1391_v7, %v68_v8  ;;  %v152_v15 = vmul.f32 %v1391_v7, %v84_v10  ;;  %v948_v16 = vld [vmem:[#allocation7 + $0x8] sm:$0xff]  ;;  %v70_v25 = vld [vmem:[#allocation2 + $0x18] sm:$0xff]  ;;  %v137_v28 = vmul.f32 %v1391_v7, %v69_v24 }
  0x14   :  { %364 = vmatpush.bf16.msra.mxu0 %v953_v1  ;;  %1149 = vmatpush.bf16.msra.mxu1 %v953_v1  ;;  %v1398_v13 = vld [vmem:[%s1834_s2] ss:$0 sm:$0xff]  ;;  %v151_v14 = vmul.f32 %v1391_v7, %v83_v9  ;;  %v947_v21 = vld [vmem:[#allocation7] sm:$0xff]  ;;  %v85_v26 = vld [vmem:[#allocation2 + $0x90] sm:$0xff]  ;;  %v138_v29 = vmul.f32 %v1391_v7, %v70_v25  ;;  %s1341_s2 = smov [#allocation8]  }
  0x15   :  { %1150 = vmatpush.bf16.msra.mxu2 %v953_v1  ;;  %1151 = vmatpush.bf16.msra.mxu3 %v953_v1  ;;  %v203_v17 = vadd.f32 %v1398_v13, %v135_v11  ;;  %v204_v18 = vadd.f32 %v1398_v13, %v136_v12  ;;  %v220_v20 = vadd.f32 %v1398_v13, %v152_v15  ;;  %v86_v27 = vld [vmem:[#allocation2 + $0x98] sm:$0xff]  ;;  %v99_v36 = vld [vmem:[#allocation2 + $0x100] sm:$0xff]  ;;  %v100_v37 = vld [vmem:[#allocation2 + $0x108] sm:$0xff]  ;;  %s868_s15 = sshll.u32 %s1341_s2, 4  ;;  %s869_s15 = int_to_ptr.vmem [resolvable:$true] %s868_s15 }
  0x16   :  { %v219_v19 = vadd.f32 %v1398_v13, %v151_v14  ;;  %v153_v30 = vmul.f32 %v1391_v7, %v85_v26  ;;  %v154_v31 = vmul.f32 %v1391_v7, %v86_v27  ;;  %v205_v32 = vadd.f32 %v1398_v13, %v137_v28  ;;  %v71_v44 = vld [vmem:[#allocation2 + $0x20] sm:$0xff]  ;;  %v72_v46 = vld [vmem:[#allocation2 + $0x28] sm:$0xff]  ;;  %v101_v57 = vld [vmem:[#allocation2 + $0x110] sm:$0xff] }
  0x17   :  { %v267_v22 = vpack.c.bf16 %v204_v18, %v203_v17  ;;  %v206_v33 = vadd.f32 %v1398_v13, %v138_v29  ;;  %v167_v40 = vmul.f32 %v1391_v7, %v99_v36  ;;  %v168_v41 = vmul.f32 %v1391_v7, %v100_v37  ;;  %v87_v47 = vld [vmem:[#allocation2 + $0xa0] sm:$0xff]  ;;  %v88_v48 = vld [vmem:[#allocation2 + $0xa8] sm:$0xff]  ;;  %v102_v58 = vld [vmem:[#allocation2 + $0x118] sm:$0xff] }
  0x18   :  { %365 = vmatpush.bf16.msra.mxu0 %v952_v2  ;;  %1152 = vmatpush.bf16.msra.mxu1 %v952_v2  ;;  %v275_v23 = vpack.c.bf16 %v220_v20, %v219_v19  ;;  %v221_v34 = vadd.f32 %v1398_v13, %v153_v30  ;;  %v222_v35 = vadd.f32 %v1398_v13, %v154_v31  ;;  %v73_v1 = vld [vmem:[#allocation2 + $0x30] sm:$0xff]  ;;  %v103_v17 = vld [vmem:[#allocation2 + $0x120] sm:$0xff]  ;;  %v104_v18 = vld [vmem:[#allocation2 + $0x128] sm:$0xff] }
  0x19   :  { %1153 = vmatpush.bf16.msra.mxu2 %v952_v2  ;;  %1154 = vmatpush.bf16.msra.mxu3 %v952_v2  ;;  %v268_v38 = vpack.c.bf16 %v206_v33, %v205_v32  ;;  %v235_v42 = vadd.f32 %v1398_v13, %v167_v40  ;;  %v236_v43 = vadd.f32 %v1398_v13, %v168_v41  ;;  %v74_v2 = vld [vmem:[#allocation2 + $0x38] sm:$0xff]  ;;  %v115_v19 = vld [vmem:[#allocation2 + $0x180] sm:$0xff]  ;;  %v76_v31 = vld [vmem:[#allocation2 + $0x48] sm:$0xff] }
  0x1a   :  { %v276_v39 = vpack.c.bf16 %v222_v35, %v221_v34  ;;  %v139_v49 = vmul.f32 %v1391_v7, %v71_v44  ;;  %v140_v50 = vmul.f32 %v1391_v7, %v72_v46  ;;  %v155_v51 = vmul.f32 %v1391_v7, %v87_v47  ;;  %v75_v30 = vld [vmem:[#allocation2 + $0x40] sm:$0xff]  ;;  %v92_v35 = vld [vmem:[#allocation2 + $0xc8] sm:$0xff]  ;;  %v106_v46 = vld [vmem:[#allocation2 + $0x138] sm:$0xff] }
  0x1b   :  { %v283_v45 = vpack.c.bf16 %v236_v43, %v235_v42  ;;  %v156_v52 = vmul.f32 %v1391_v7, %v88_v48  ;;  %v169_v61 = vmul.f32 %v1391_v7, %v101_v57  ;;  %v170_v62 = vmul.f32 %v1391_v7, %v102_v58  ;;  %v91_v34 = vld [vmem:[#allocation2 + $0xc0] sm:$0xff]  ;;  %v117_v47 = vld [vmem:[#allocation2 + $0x190] sm:$0xff] }
  0x1c   :  { %366 = vmatpush.bf16.msra.mxu0 %v951_v3  ;;  %1155 = vmatpush.bf16.msra.mxu1 %v951_v3  ;;  %v207_v53 = vadd.f32 %v1398_v13, %v139_v49  ;;  %v208_v54 = vadd.f32 %v1398_v13, %v140_v50  ;;  %v223_v55 = vadd.f32 %v1398_v13, %v155_v51  ;;  %v118_v51 = vld [vmem:[#allocation2 + $0x198] sm:$0xff]  ;;  %v77_v58 = vld [vmem:[#allocation2 + $0x50] sm:$0xff] }
  0x1d   :  { %1156 = vmatpush.bf16.msra.mxu2 %v951_v3  ;;  %1157 = vmatpush.bf16.msra.mxu3 %v951_v3  ;;  %v224_v56 = vadd.f32 %v1398_v13, %v156_v52  ;;  %v237_v63 = vadd.f32 %v1398_v13, %v169_v61  ;;  %v238_v0 = vadd.f32 %v1398_v13, %v170_v62  ;;  %v93_v62 = vld [vmem:[#allocation2 + $0xd0] sm:$0xff] }
  0x1e   :  { %v269_v59 = vpack.c.bf16 %v208_v54, %v207_v53  ;;  %v141_v6 = vmul.f32 %v1391_v7, %v73_v1  ;;  %v142_v8 = vmul.f32 %v1391_v7, %v74_v2  ;;  %v183_v24 = vmul.f32 %v1391_v7, %v115_v19 }
  0x1f   :  { %v277_v60 = vpack.c.bf16 %v224_v56, %v223_v55  ;;  %v284_v3 = vpack.c.bf16 %v238_v0, %v237_v63  ;;  %v143_v36 = vmul.f32 %v1391_v7, %v75_v30  ;;  %v144_v37 = vmul.f32 %v1391_v7, %v76_v31  ;;  %v94_v63 = vld [vmem:[#allocation2 + $0xd8] sm:$0xff] }
  0x20   :  { %367 = vmatpush.bf16.msra.mxu0 %v950_v4  ;;  %1158 = vmatpush.bf16.msra.mxu1 %v950_v4  ;;  %v209_v11 = vadd.f32 %v1398_v13, %v141_v6  ;;  %v210_v12 = vadd.f32 %v1398_v13, %v142_v8  ;;  %v251_v28 = vadd.f32 %v1398_v13, %v183_v24  ;;  %v79_v24 = vld [vmem:[#allocation2 + $0x60] sm:$0xff] }
  0x21   :  { %1159 = vmatpush.bf16.msra.mxu2 %v950_v4  ;;  %1160 = vmatpush.bf16.msra.mxu3 %v950_v4  ;;  %v89_v4 = vld [vmem:[#allocation2 + $0xb0] sm:$0xff]  ;;  %v211_v40 = vadd.f32 %v1398_v13, %v143_v36  ;;  %v212_v41 = vadd.f32 %v1398_v13, %v144_v37  ;;  %v174_v50 = vmul.f32 %v1391_v7, %v106_v46 }
  0x22   :  { %v157_v9 = vmul.f32 %v1391_v7, %v89_v4  ;;  %v185_v52 = vmul.f32 %v1391_v7, %v117_v47  ;;  %v186_v53 = vmul.f32 %v1391_v7, %v118_v51  ;;  %v145_v0 = vmul.f32 %v1391_v7, %v77_v58 }
  0x23   :  { %v271_v44 = vpack.c.bf16 %v212_v41, %v211_v40  ;;  %v242_v55 = vadd.f32 %v1398_v13, %v174_v50  ;;  %v161_v2 = vmul.f32 %v1391_v7, %v93_v62  ;;  %v147_v30 = vmul.f32 %v1391_v7, %v79_v24  ;;  %v110_v40 = vld [vmem:[#allocation2 + $0x158] sm:$0xff]  ;;  %v121_v41 = vld [vmem:[#allocation2 + $0x1b0] sm:$0xff] }
  0x24   :  { %368 = vmatpush.bf16.msra.mxu0 %v949_v5  ;;  %1161 = vmatpush.bf16.msra.mxu1 %v949_v5  ;;  %v225_v14 = vadd.f32 %v1398_v13, %v157_v9  ;;  %v253_v56 = vadd.f32 %v1398_v13, %v185_v52  ;;  %v254_v57 = vadd.f32 %v1398_v13, %v186_v53  ;;  %v81_v52 = vld [vmem:[#allocation2 + $0x70] sm:$0xff]  ;;  %v82_v53 = vld [vmem:[#allocation2 + $0x78] sm:$0xff] }
  0x25   :  { %1162 = vmatpush.bf16.msra.mxu2 %v949_v5  ;;  %1163 = vmatpush.bf16.msra.mxu3 %v949_v5  ;;  %v90_v5 = vld [vmem:[#allocation2 + $0xb8] sm:$0xff]  ;;  %v213_v4 = vadd.f32 %v1398_v13, %v145_v0  ;;  %v229_v6 = vadd.f32 %v1398_v13, %v161_v2  ;;  %v189_v46 = vmul.f32 %v1391_v7, %v121_v41 }
  0x26   :  { %v158_v10 = vmul.f32 %v1391_v7, %v90_v5  ;;  %v292_v61 = vpack.c.bf16 %v254_v57, %v253_v56  ;;  %v97_v56 = vld [vmem:[#allocation2 + $0xf0] sm:$0xff]  ;;  %v98_v57 = vld [vmem:[#allocation2 + $0xf8] sm:$0xff]  ;;  %v149_v58 = vmul.f32 %v1391_v7, %v81_v52 }
  0x27   :  { %v257_v50 = vadd.f32 %v1398_v13, %v189_v46 }
  0x28   :  { %369 = vmatpush.bf16.msra.mxu0 %v948_v16  ;;  %1164 = vmatpush.bf16.msra.mxu1 %v948_v16  ;;  %v226_v15 = vadd.f32 %v1398_v13, %v158_v10  ;;  %v107_v10 = vld [vmem:[#allocation2 + $0x140] sm:$0xff]  ;;  %v217_v62 = vadd.f32 %v1398_v13, %v149_v58 }
  0x29   :  { %1165 = vmatpush.bf16.msra.mxu2 %v948_v16  ;;  %1166 = vmatpush.bf16.msra.mxu3 %v948_v16  ;;  %v270_v16 = vpack.c.bf16 %v210_v12, %v209_v11  ;;  %v108_v11 = vld [vmem:[#allocation2 + $0x148] sm:$0xff]  ;;  %v119_v12 = vld [vmem:[#allocation2 + $0x1a0] sm:$0xff] }
  0x2a   :  { %v278_v20 = vpack.c.bf16 %v226_v15, %v225_v14  ;;  %v175_v15 = vmul.f32 %v1391_v7, %v107_v10  ;;  %v124_v10 = vld [vmem:[#allocation2 + $0x1c8] sm:$0xff] }
  0x2c   :  { %370 = vmatpush.bf16.msra.mxu0 %v947_v21  ;;  %1167 = vmatpush.bf16.msra.mxu1 %v947_v21 }
  0x2d   :  { %1168 = vmatpush.bf16.msra.mxu2 %v947_v21  ;;  %1169 = vmatpush.bf16.msra.mxu3 %v947_v21  ;;  %v171_v21 = vmul.f32 %v1391_v7, %v103_v17  ;;  %v120_v17 = vld [vmem:[#allocation2 + $0x1a8] sm:$0xff] }
  0x2e   :  { %v188_v19 = vmul.f32 %v1391_v7, %v120_v17 }
  0x2f   :  { %371 = vmatmul.bf16.vlgmr.msra.gmra.mxu0 %v267_v22  ;;  %411 = vmatmul.bf16.vlgmr.msra.gmra.mxu1 %v275_v23  ;;  %v172_v22 = vmul.f32 %v1391_v7, %v104_v18  ;;  %v116_v23 = vld [vmem:[#allocation2 + $0x188] sm:$0xff]  ;;  %v239_v26 = vadd.f32 %v1398_v13, %v171_v21  ;;  %v187_v18 = vmul.f32 %v1391_v7, %v119_v12 }
  0x30   :  { %451 = vmatmul.bf16.vlgmr.msra.gmra.mxu2 %v283_v45  ;;  %v184_v25 = vmul.f32 %v1391_v7, %v116_v23  ;;  %v105_v45 = vld [vmem:[#allocation2 + $0x130] sm:$0xff]  ;;  %v256_v23 = vadd.f32 %v1398_v13, %v188_v19  ;;  %v192_v12 = vmul.f32 %v1391_v7, %v124_v10 }
  0x31   :  { %v240_v27 = vadd.f32 %v1398_v13, %v172_v22  ;;  %v173_v49 = vmul.f32 %v1391_v7, %v105_v45  ;;  %v255_v22 = vadd.f32 %v1398_v13, %v187_v18  ;;  %v122_v45 = vld [vmem:[#allocation2 + $0x1b8] sm:$0xff] }
  0x32   :  { %v252_v29 = vadd.f32 %v1398_v13, %v184_v25  ;;  %v80_v25 = vld [vmem:[#allocation2 + $0x68] sm:$0xff]  ;;  %v190_v47 = vmul.f32 %v1391_v7, %v122_v45  ;;  %v260_v17 = vadd.f32 %v1398_v13, %v192_v12 }
  0x33   :  { %v285_v32 = vpack.c.bf16 %v240_v27, %v239_v26  ;;  %v241_v54 = vadd.f32 %v1398_v13, %v173_v49  ;;  %v293_v27 = vpack.c.bf16 %v256_v23, %v255_v22  ;;  %v148_v31 = vmul.f32 %v1391_v7, %v80_v25  ;;  %v125_v22 = vld [vmem:[#allocation2 + $0x1d0] sm:$0xff]  ;;  %v126_v25 = vld [vmem:[#allocation2 + $0x1d8] sm:$0xff]  ;;  %v128_v45 = vld [vmem:[#allocation2 + $0x1e8] sm:$0xff] }
  0x34   :  { %v291_v33 = vpack.c.bf16 %v252_v29, %v251_v28  ;;  %v95_v28 = vld [vmem:[#allocation2 + $0xe0] sm:$0xff]  ;;  %v96_v29 = vld [vmem:[#allocation2 + $0xe8] sm:$0xff]  ;;  %v258_v51 = vadd.f32 %v1398_v13, %v190_v47  ;;  %v196_v47 = vmul.f32 %v1391_v7, %v128_v45 }
  0x36   :  { %491 = vmatmul.bf16.vlgmr.msra.gmra.mxu3 %v291_v33  ;;  %v164_v33 = vmul.f32 %v1391_v7, %v96_v29  ;;  %v194_v29 = vmul.f32 %v1391_v7, %v126_v25 }
  0x38   :  { %v232_v37 = vadd.f32 %v1398_v13, %v164_v33  ;;  %v262_v33 = vadd.f32 %v1398_v13, %v194_v29 }
  0x3f   :  { %376 = vmatmul.bf16.gmra.mxu0 %v268_v38  ;;  %416 = vmatmul.bf16.gmra.mxu1 %v276_v39  ;;  %v159_v38 = vmul.f32 %v1391_v7, %v91_v34  ;;  %v160_v39 = vmul.f32 %v1391_v7, %v92_v35  ;;  %v215_v34 = vadd.f32 %v1398_v13, %v147_v30 }
  0x40   :  { %456 = vmatmul.bf16.gmra.mxu2 %v284_v3  ;;  %v162_v3 = vmul.f32 %v1391_v7, %v94_v63  ;;  %v216_v35 = vadd.f32 %v1398_v13, %v148_v31 }
  0x41   :  { %v227_v42 = vadd.f32 %v1398_v13, %v159_v38  ;;  %v228_v43 = vadd.f32 %v1398_v13, %v160_v39  ;;  %v109_v39 = vld [vmem:[#allocation2 + $0x150] sm:$0xff] }
  0x42   :  { %v230_v8 = vadd.f32 %v1398_v13, %v162_v3  ;;  %v273_v38 = vpack.c.bf16 %v216_v35, %v215_v34  ;;  %v111_v3 = vld [vmem:[#allocation2 + $0x160] sm:$0xff] }
  0x43   :  { %v279_v48 = vpack.c.bf16 %v228_v43, %v227_v42  ;;  %v177_v43 = vmul.f32 %v1391_v7, %v109_v39 }
  0x44   :  { %v280_v14 = vpack.c.bf16 %v230_v8, %v229_v6  ;;  %v179_v8 = vmul.f32 %v1391_v7, %v111_v3 }
  0x46   :  { %496 = vmatmul.bf16.gmra.mxu3 %v292_v61  ;;  %v166_v61 = vmul.f32 %v1391_v7, %v98_v57 }
  0x4f   :  { %381 = vmatmul.bf16.gmra.mxu0 %v269_v59  ;;  %421 = vmatmul.bf16.gmra.mxu1 %v277_v60  ;;  %v78_v59 = vld [vmem:[#allocation2 + $0x58] sm:$0xff]  ;;  %v286_v60 = vpack.c.bf16 %v242_v55, %v241_v54  ;;  %v294_v55 = vpack.c.bf16 %v258_v51, %v257_v50 }
  0x50   :  { %461 = vmatmul.bf16.gmra.mxu2 %v285_v32  ;;  %v146_v1 = vmul.f32 %v1391_v7, %v78_v59  ;;  %v163_v32 = vmul.f32 %v1391_v7, %v95_v28  ;;  %v150_v59 = vmul.f32 %v1391_v7, %v82_v53  ;;  %v264_v53 = vadd.f32 %v1398_v13, %v196_v47 }
  0x52   :  { %v214_v5 = vadd.f32 %v1398_v13, %v146_v1  ;;  %v231_v36 = vadd.f32 %v1398_v13, %v163_v32  ;;  %v218_v63 = vadd.f32 %v1398_v13, %v150_v59  ;;  %v234_v1 = vadd.f32 %v1398_v13, %v166_v61 }
  0x54   :  { %v272_v9 = vpack.c.bf16 %v214_v5, %v213_v4  ;;  %v281_v42 = vpack.c.bf16 %v232_v37, %v231_v36  ;;  %v274_v2 = vpack.c.bf16 %v218_v63, %v217_v62  ;;  %v112_v4 = vld [vmem:[#allocation2 + $0x168] sm:$0xff]  ;;  %v123_v5 = vld [vmem:[#allocation2 + $0x1c0] sm:$0xff] }
  0x56   :  { %501 = vmatmul.bf16.gmra.mxu3 %v293_v27 }
  0x5f   :  { %386 = vmatmul.bf16.gmra.mxu0 %v270_v16  ;;  %426 = vmatmul.bf16.gmra.mxu1 %v278_v20  ;;  %v176_v16 = vmul.f32 %v1391_v7, %v108_v11  ;;  %v243_v20 = vadd.f32 %v1398_v13, %v175_v15  ;;  %v191_v11 = vmul.f32 %v1391_v7, %v123_v5 }
  0x60   :  { %466 = vmatmul.bf16.gmra.mxu2 %v286_v60  ;;  %v165_v60 = vmul.f32 %v1391_v7, %v97_v56 }
  0x61   :  { %v244_v21 = vadd.f32 %v1398_v13, %v176_v16  ;;  %v259_v16 = vadd.f32 %v1398_v13, %v191_v11 }
  0x62   :  { %v233_v0 = vadd.f32 %v1398_v13, %v165_v60 }
  0x63   :  { %v287_v26 = vpack.c.bf16 %v244_v21, %v243_v20  ;;  %v295_v19 = vpack.c.bf16 %v260_v17, %v259_v16  ;;  %v113_v20 = vld [vmem:[#allocation2 + $0x170] sm:$0xff]  ;;  %v114_v21 = vld [vmem:[#allocation2 + $0x178] sm:$0xff] }
  0x64   :  { %v282_v6 = vpack.c.bf16 %v234_v1, %v233_v0  ;;  %v181_v23 = vmul.f32 %v1391_v7, %v113_v20  ;;  %v182_v24 = vmul.f32 %v1391_v7, %v114_v21  ;;  %v129_v0 = vld [vmem:[#allocation2 + $0x1f0] sm:$0xff]  ;;  %v130_v1 = vld [vmem:[#allocation2 + $0x1f8] sm:$0xff] }
  0x65   :  { %v198_v3 = vmul.f32 %v1391_v7, %v130_v1 }
  0x66   :  { %506 = vmatmul.bf16.gmra.mxu3 %v294_v55  ;;  %v249_v30 = vadd.f32 %v1398_v13, %v181_v23  ;;  %v250_v31 = vadd.f32 %v1398_v13, %v182_v24 }
  0x67   :  { %v266_v12 = vadd.f32 %v1398_v13, %v198_v3 }
  0x68   :  { %v290_v34 = vpack.c.bf16 %v250_v31, %v249_v30 }
  0x6f   :  { %391 = vmatmul.bf16.gmra.mxu0 %v271_v44  ;;  %431 = vmatmul.bf16.gmra.mxu1 %v279_v48  ;;  %v178_v44 = vmul.f32 %v1391_v7, %v110_v40  ;;  %v245_v48 = vadd.f32 %v1398_v13, %v177_v43 }
  0x70   :  { %471 = vmatmul.bf16.gmra.mxu2 %v287_v26  ;;  %v193_v26 = vmul.f32 %v1391_v7, %v125_v22 }
  0x71   :  { %v246_v49 = vadd.f32 %v1398_v13, %v178_v44  ;;  %v127_v44 = vld [vmem:[#allocation2 + $0x1e0] sm:$0xff] }
  0x72   :  { %v261_v32 = vadd.f32 %v1398_v13, %v193_v26  ;;  %v195_v46 = vmul.f32 %v1391_v7, %v127_v44 }
  0x73   :  { %v288_v54 = vpack.c.bf16 %v246_v49, %v245_v48 }
  0x74   :  { %v296_v35 = vpack.c.bf16 %v262_v33, %v261_v32  ;;  %v263_v52 = vadd.f32 %v1398_v13, %v195_v46 }
  0x76   :  { %511 = vmatmul.bf16.gmra.mxu3 %v295_v19  ;;  %v297_v55 = vpack.c.bf16 %v264_v53, %v263_v52 }
  0x7f   :  { %396 = vmatmul.bf16.gmra.mxu0 %v272_v9  ;;  %436 = vmatmul.bf16.gmra.mxu1 %v280_v14  ;;  %v180_v9 = vmul.f32 %v1391_v7, %v112_v4  ;;  %v247_v14 = vadd.f32 %v1398_v13, %v179_v8 }
  0x80   :  { %476 = vmatmul.bf16.gmra.mxu2 %v288_v54 }
  0x81   :  { %v248_v15 = vadd.f32 %v1398_v13, %v180_v9 }
  0x83   :  { %v289_v18 = vpack.c.bf16 %v248_v15, %v247_v14 }
  0x86   :  { %516 = vmatmul.bf16.gmra.mxu3 %v296_v35 }
  0x8f   :  { %401 = vmatmul.bf16.gmra.mxu0 %v273_v38  ;;  %441 = vmatmul.bf16.gmra.mxu1 %v281_v42 }
  0x90   :  { %481 = vmatmul.bf16.gmra.mxu2 %v289_v18 }
  0x96   :  { %521 = vmatmul.bf16.gmra.mxu3 %v297_v55 }
  0x9f   :  { %406 = vmatmul.bf16.gmra.mxu0 %v274_v2  ;;  %446 = vmatmul.bf16.gmra.mxu1 %v282_v6  ;;  %v197_v2 = vmul.f32 %v1391_v7, %v129_v0 }
  0xa0   :  { %486 = vmatmul.bf16.gmra.mxu2 %v290_v34 }
  0xa1   :  { %v265_v10 = vadd.f32 %v1398_v13, %v197_v2 }
  0xa3   :  { %v298_v15 = vpack.c.bf16 %v266_v12, %v265_v10 }
  0xa6   :  { %526 = vmatmul.bf16.gmra.mxu3 %v298_v15 }
  0xac   :  { %v372_v27 = vpop.f32.mrf.mxu0  ;;  %v1513_v28 = vpop.f32.mrf.mxu1 }
  0xad   :  { %v730_v36 = vmul.f32 %v372_v27, %v372_v27 }
  0xb3   :  { %v1534_v62 = vpop.f32.mrf.mxu2 }
  0xb4   :  { %v374_v37 = vpop.f32.mrf.mxu0  ;;  %v1520_v38 = vpop.f32.mrf.mxu1 }
  0xb5   :  { %v958_v39 = vpack.c.bf16 %v374_v37, %v372_v27  ;;  %v660_v40 = vadd.f32 %v374_v37, %v372_v27  ;;  %v731_v41 = vmul.f32 %v374_v37, %v374_v37  ;;  %v998_v42 = vpack.c.bf16 %v1520_v38, %v1513_v28 }
  0xb7   :  { %959 = vst [vmem:[#allocation8] sm:$0xff] %v958_v39   ;;  %v794_v43 = vadd.f32 %v731_v41, %v730_v36 }
  0xb8   :  { %1122 = vst [vmem:[#allocation8 + $0x40] sm:$0xff] %v998_v42  }
  0xb9   :  { %v1568_v29 = vpop.f32.mrf.mxu3 }
  0xbb   :  { %v1542_v9 = vpop.f32.mrf.mxu2 }
  0xbc   :  { %v377_v48 = vpop.f32.mrf.mxu0  ;;  %v1526_v49 = vpop.f32.mrf.mxu1  ;;  %v1038_v11 = vpack.c.bf16 %v1542_v9, %v1534_v62 }
  0xbd   :  { %v661_v50 = vadd.f32 %v660_v40, %v377_v48  ;;  %v732_v51 = vmul.f32 %v377_v48, %v377_v48 }
  0xbe   :  { %1130 = vst [vmem:[#allocation8 + $0x80] sm:$0xff] %v1038_v11  }
  0xbf   :  { %v795_v54 = vadd.f32 %v794_v43, %v732_v51 }
  0xc1   :  { %v1574_v33 = vpop.f32.mrf.mxu3 }
  0xc2   :  { %v1078_v35 = vpack.c.bf16 %v1574_v33, %v1568_v29 }
  0xc3   :  { %v1554_v19 = vpop.f32.mrf.mxu2 }
  0xc4   :  { %v379_v56 = vpop.f32.mrf.mxu0  ;;  %v1530_v57 = vpop.f32.mrf.mxu1  ;;  %1138 = vst [vmem:[#allocation8 + $0xc0] sm:$0xff] %v1078_v35  }
  0xc5   :  { %v963_v58 = vpack.c.bf16 %v379_v56, %v377_v48  ;;  %v662_v59 = vadd.f32 %v661_v50, %v379_v56  ;;  %v733_v60 = vmul.f32 %v379_v56, %v379_v56  ;;  %v1003_v61 = vpack.c.bf16 %v1530_v57, %v1526_v49 }
  0xc7   :  { %1115 = vst [vmem:[#allocation8 + $0x8] sm:$0xff] %v963_v58   ;;  %v796_v63 = vadd.f32 %v795_v54, %v733_v60 }
  0xc8   :  { %1123 = vst [vmem:[#allocation8 + $0x48] sm:$0xff] %v1003_v61  }
  0xc9   :  { %v1586_v42 = vpop.f32.mrf.mxu3 }
  0xcb   :  { %v1558_v13 = vpop.f32.mrf.mxu2 }
  0xcc   :  { %v382_v4 = vpop.f32.mrf.mxu0  ;;  %v1538_v5 = vpop.f32.mrf.mxu1  ;;  %v1043_v22 = vpack.c.bf16 %v1558_v13, %v1554_v19 }
  0xcd   :  { %v1540_v6 = vadd.f32 %v662_v59, %v382_v4  ;;  %v734_v8 = vmul.f32 %v382_v4, %v382_v4 }
  0xce   :  { %1131 = vst [vmem:[#allocation8 + $0x88] sm:$0xff] %v1043_v22  }
  0xcf   :  { %v1548_v14 = vadd.f32 %v796_v63, %v734_v8 }
  0xd1   :  { %v1592_v46 = vpop.f32.mrf.mxu3 }
  0xd2   :  { %v1083_v48 = vpack.c.bf16 %v1592_v46, %v1586_v42 }
  0xd3   :  { %v1566_v27 = vpop.f32.mrf.mxu2 }
  0xd4   :  { %v384_v7 = vpop.f32.mrf.mxu0  ;;  %v1550_v16 = vpop.f32.mrf.mxu1  ;;  %1139 = vst [vmem:[#allocation8 + $0xc8] sm:$0xff] %v1083_v48  }
  0xd5   :  { %v968_v17 = vpack.c.bf16 %v384_v7, %v382_v4  ;;  %v1008_v18 = vpack.c.bf16 %v1550_v16, %v1538_v5  ;;  %v735_v61 = vmul.f32 %v384_v7, %v384_v7  ;;  %v664_v2 = vadd.f32 %v1540_v6, %v384_v7 }
  0xd7   :  { %1116 = vst [vmem:[#allocation8 + $0x10] sm:$0xff] %v968_v17   ;;  %v798_v3 = vadd.f32 %v1548_v14, %v735_v61 }
  0xd8   :  { %1124 = vst [vmem:[#allocation8 + $0x50] sm:$0xff] %v1008_v18  }
  0xd9   :  { %v1604_v55 = vpop.f32.mrf.mxu3 }
  0xdb   :  { %v1572_v32 = vpop.f32.mrf.mxu2 }
  0xdc   :  { %v387_v20 = vpop.f32.mrf.mxu0  ;;  %v1556_v21 = vpop.f32.mrf.mxu1  ;;  %v1048_v34 = vpack.c.bf16 %v1572_v32, %v1566_v27 }
  0xdd   :  { %v736_v1 = vmul.f32 %v387_v20, %v387_v20  ;;  %v665_v8 = vadd.f32 %v664_v2, %v387_v20 }
  0xde   :  { %1132 = vst [vmem:[#allocation8 + $0x90] sm:$0xff] %v1048_v34  }
  0xdf   :  { %v799_v10 = vadd.f32 %v798_v3, %v736_v1 }
  0xe1   :  { %v1610_v60 = vpop.f32.mrf.mxu3 }
  0xe2   :  { %v1088_v0 = vpack.c.bf16 %v1610_v60, %v1604_v55 }
  0xe3   :  { %v1584_v41 = vpop.f32.mrf.mxu2 }
  0xe4   :  { %v389_v23 = vpop.f32.mrf.mxu0  ;;  %v1562_v24 = vpop.f32.mrf.mxu1  ;;  %1140 = vst [vmem:[#allocation8 + $0xd0] sm:$0xff] %v1088_v0  }
  0xe5   :  { %v973_v25 = vpack.c.bf16 %v389_v23, %v387_v20  ;;  %v1013_v26 = vpack.c.bf16 %v1562_v24, %v1556_v21  ;;  %v737_v4 = vmul.f32 %v389_v23, %v389_v23  ;;  %v666_v17 = vadd.f32 %v665_v8, %v389_v23 }
  0xe7   :  { %1117 = vst [vmem:[#allocation8 + $0x18] sm:$0xff] %v973_v25   ;;  %v800_v6 = vadd.f32 %v799_v10, %v737_v4 }
  0xe8   :  { %1125 = vst [vmem:[#allocation8 + $0x58] sm:$0xff] %v1013_v26  }
  0xe9   :  { %v1624_v26 = vpop.f32.mrf.mxu3 }
  0xeb   :  { %v1590_v45 = vpop.f32.mrf.mxu2 }
  0xec   :  { %v392_v30 = vpop.f32.mrf.mxu0  ;;  %v1570_v31 = vpop.f32.mrf.mxu1  ;;  %v1053_v47 = vpack.c.bf16 %v1590_v45, %v1584_v41 }
  0xed   :  { %v738_v11 = vmul.f32 %v392_v30, %v392_v30  ;;  %v667_v34 = vadd.f32 %v666_v17, %v392_v30 }
  0xee   :  { %1133 = vst [vmem:[#allocation8 + $0x98] sm:$0xff] %v1053_v47  }
  0xef   :  { %v801_v14 = vadd.f32 %v800_v6, %v738_v11 }
  0xf1   :  { %v1630_v0 = vpop.f32.mrf.mxu3 }
  0xf3   :  { %v1602_v54 = vpop.f32.mrf.mxu2 }
  0xf4   :  { %v394_v36 = vpop.f32.mrf.mxu0  ;;  %v1580_v37 = vpop.f32.mrf.mxu1 }
  0xf5   :  { %v978_v39 = vpack.c.bf16 %v394_v36, %v392_v30  ;;  %v1018_v40 = vpack.c.bf16 %v1580_v37, %v1570_v31  ;;  %v739_v7 = vmul.f32 %v394_v36, %v394_v36  ;;  %v668_v35 = vadd.f32 %v667_v34, %v394_v36 }
  0xf6   :  { %v1093_v36 = vpack.c.bf16 %v1630_v0, %v1624_v26 }
  0xf7   :  { %1118 = vst [vmem:[#allocation8 + $0x20] sm:$0xff] %v978_v39   ;;  %v802_v39 = vadd.f32 %v801_v14, %v739_v7 }
  0xf8   :  { %1126 = vst [vmem:[#allocation8 + $0x60] sm:$0xff] %v1018_v40  }
  0xf9   :  { %1141 = vst [vmem:[#allocation8 + $0xd8] sm:$0xff] %v1093_v36  }
  0xfb   :  { %v1608_v59 = vpop.f32.mrf.mxu2 }
  0xfc   :  { %v397_v43 = vpop.f32.mrf.mxu0  ;;  %v1588_v44 = vpop.f32.mrf.mxu1  ;;  %v1058_v63 = vpack.c.bf16 %v1608_v59, %v1602_v54 }
  0xfd   :  { %v740_v20 = vmul.f32 %v397_v43, %v397_v43  ;;  %v669_v47 = vadd.f32 %v668_v35, %v397_v43 }
  0xfe   :  { %1134 = vst [vmem:[#allocation8 + $0xa0] sm:$0xff] %v1058_v63  }
  0xff   :  { %v803_v23 = vadd.f32 %v802_v39, %v740_v20  ;;  %v747_v39 = vmul.f32 %v1520_v38, %v1520_v38 }
 0x103   :  { %v1622_v25 = vpop.f32.mrf.mxu2 }
 0x104   :  { %v399_v50 = vpop.f32.mrf.mxu0  ;;  %v1598_v51 = vpop.f32.mrf.mxu1 }
 0x105   :  { %v983_v52 = vpack.c.bf16 %v399_v50, %v397_v43  ;;  %v1023_v53 = vpack.c.bf16 %v1598_v51, %v1588_v44  ;;  %v741_v40 = vmul.f32 %v399_v50, %v399_v50  ;;  %v670_v61 = vadd.f32 %v669_v47, %v399_v50 }
 0x107   :  { %1119 = vst [vmem:[#allocation8 + $0x28] sm:$0xff] %v983_v52   ;;  %v804_v1 = vadd.f32 %v803_v23, %v741_v40  ;;  %v748_v23 = vmul.f32 %v1526_v49, %v1526_v49 }
 0x108   :  { %1127 = vst [vmem:[#allocation8 + $0x68] sm:$0xff] %v1023_v53  }
 0x10b   :  { %v1628_v63 = vpop.f32.mrf.mxu2 }
 0x10c   :  { %v402_v56 = vpop.f32.mrf.mxu0  ;;  %v1606_v58 = vpop.f32.mrf.mxu1  ;;  %v1063_v2 = vpack.c.bf16 %v1628_v63, %v1622_v25 }
 0x10d   :  { %v742_v48 = vmul.f32 %v402_v56, %v402_v56  ;;  %v671_v3 = vadd.f32 %v670_v61, %v402_v56  ;;  %v749_v61 = vmul.f32 %v1530_v57, %v1530_v57 }
 0x10e   :  { %1135 = vst [vmem:[#allocation8 + $0xa8] sm:$0xff] %v1063_v2  }
 0x10f   :  { %v805_v43 = vadd.f32 %v804_v1, %v742_v48 }
 0x113   :  { %v1640_v14 = vpop.f32.mrf.mxu2 }
 0x114   :  { %v404_v12 = vpop.f32.mrf.mxu0  ;;  %v1618_v15 = vpop.f32.mrf.mxu1 }
 0x115   :  { %v988_v18 = vpack.c.bf16 %v404_v12, %v402_v56  ;;  %v1028_v22 = vpack.c.bf16 %v1618_v15, %v1606_v58  ;;  %v743_v30 = vmul.f32 %v404_v12, %v404_v12  ;;  %v672_v8 = vadd.f32 %v671_v3, %v404_v12  ;;  %v1642_v56 = vpop.f32.mrf.mxu3 }
 0x116   :  { %v746_v12 = vmul.f32 %v1513_v28, %v1513_v28 }
 0x117   :  { %1120 = vst [vmem:[#allocation8 + $0x30] sm:$0xff] %v988_v18   ;;  %v806_v10 = vadd.f32 %v805_v43, %v743_v30 }
 0x118   :  { %1128 = vst [vmem:[#allocation8 + $0x70] sm:$0xff] %v1028_v22  }
 0x11b   :  { %v1656_v30 = vpop.f32.mrf.mxu2 }
 0x11c   :  { %v407_v52 = vpop.f32.mrf.mxu0  ;;  %v1626_v53 = vpop.f32.mrf.mxu1 }
 0x11d   :  { %v744_v4 = vmul.f32 %v407_v52, %v407_v52  ;;  %v673_v50 = vadd.f32 %v672_v8, %v407_v52  ;;  %v1658_v2 = vpop.f32.mrf.mxu3 }
 0x11e   :  { %v1098_v36 = vpack.c.bf16 %v1658_v2, %v1642_v56 }
 0x11f   :  { %v807_v11 = vadd.f32 %v806_v10, %v744_v4  ;;  %v752_v10 = vmul.f32 %v1556_v21, %v1556_v21 }
 0x120   :  { %1142 = vst [vmem:[#allocation8 + $0xe0] sm:$0xff] %v1098_v36   ;;  %v759_v36 = vmul.f32 %v1618_v15, %v1618_v15 }
 0x124   :  { %v409_v17 = vpop.f32.mrf.mxu0  ;;  %v1636_v18 = vpop.f32.mrf.mxu1 }
 0x125   :  { %v993_v22 = vpack.c.bf16 %v409_v17, %v407_v52  ;;  %v674_v6 = vadd.f32 %v673_v50, %v409_v17  ;;  %v745_v7 = vmul.f32 %v409_v17, %v409_v17  ;;  %v1033_v34 = vpack.c.bf16 %v1636_v18, %v1626_v53 }
 0x126   :  { %v753_v17 = vmul.f32 %v1562_v24, %v1562_v24 }
 0x127   :  { %1121 = vst [vmem:[#allocation8 + $0x38] sm:$0xff] %v993_v22   ;;  %v675_v20 = vadd.f32 %v674_v6, %v1513_v28  ;;  %v808_v35 = vadd.f32 %v807_v11, %v745_v7  ;;  %v1676_v6 = vpop.f32.mrf.mxu2  ;;  %v1678_v7 = vpop.f32.mrf.mxu3 }
 0x128   :  { %1129 = vst [vmem:[#allocation8 + $0x78] sm:$0xff] %v1033_v34  }
 0x129   :  { %v676_v40 = vadd.f32 %v675_v20, %v1520_v38  ;;  %v809_v47 = vadd.f32 %v808_v35, %v746_v12  ;;  %v1068_v38 = vpack.c.bf16 %v1656_v30, %v1640_v14  ;;  %v755_v20 = vmul.f32 %v1580_v37, %v1580_v37 }
 0x12b   :  { %v677_v48 = vadd.f32 %v676_v40, %v1526_v49  ;;  %v810_v52 = vadd.f32 %v809_v47, %v747_v39  ;;  %v750_v49 = vmul.f32 %v1538_v5, %v1538_v5  ;;  %1136 = vst [vmem:[#allocation8 + $0xb0] sm:$0xff] %v1068_v38   ;;  %v757_v47 = vmul.f32 %v1598_v51, %v1598_v51 }
 0x12d   :  { %v678_v1 = vadd.f32 %v677_v48, %v1530_v57  ;;  %v811_v28 = vadd.f32 %v810_v52, %v748_v23  ;;  %v751_v57 = vmul.f32 %v1550_v16, %v1550_v16 }
 0x12f   :  { %v679_v3 = vadd.f32 %v678_v1, %v1538_v5  ;;  %v812_v43 = vadd.f32 %v811_v28, %v749_v61  ;;  %v1694_v52 = vpop.f32.mrf.mxu3 }
 0x130   :  { %v1103_v61 = vpack.c.bf16 %v1694_v52, %v1678_v7 }
 0x131   :  { %v680_v4 = vadd.f32 %v679_v3, %v1550_v16  ;;  %v813_v8 = vadd.f32 %v812_v43, %v750_v49  ;;  %v754_v16 = vmul.f32 %v1570_v31, %v1570_v31  ;;  %v760_v43 = vmul.f32 %v1626_v53, %v1626_v53 }
 0x132   :  { %1143 = vst [vmem:[#allocation8 + $0xe8] sm:$0xff] %v1103_v61   ;;  %v770_v61 = vmul.f32 %v1602_v54, %v1602_v54 }
 0x133   :  { %v814_v50 = vadd.f32 %v813_v8, %v751_v57  ;;  %v681_v11 = vadd.f32 %v680_v4, %v1556_v21 }
 0x135   :  { %v682_v5 = vadd.f32 %v681_v11, %v1562_v24  ;;  %v815_v22 = vadd.f32 %v814_v50, %v752_v10  ;;  %v756_v24 = vmul.f32 %v1588_v44, %v1588_v44  ;;  %v762_v10 = vmul.f32 %v1534_v62, %v1534_v62 }
 0x136   :  { %v763_v11 = vmul.f32 %v1542_v9, %v1542_v9 }
 0x137   :  { %v683_v34 = vadd.f32 %v682_v5, %v1570_v31  ;;  %v816_v12 = vadd.f32 %v815_v22, %v753_v17  ;;  %v1692_v31 = vpop.f32.mrf.mxu2  ;;  %v1712_v8 = vpop.f32.mrf.mxu3  ;;  %v764_v5 = vmul.f32 %v1554_v19, %v1554_v19 }
 0x139   :  { %v684_v21 = vadd.f32 %v683_v34, %v1580_v37  ;;  %v817_v35 = vadd.f32 %v816_v12, %v754_v16  ;;  %v1073_v37 = vpack.c.bf16 %v1692_v31, %v1676_v6  ;;  %v765_v16 = vmul.f32 %v1558_v13, %v1558_v13 }
 0x13b   :  { %v685_v39 = vadd.f32 %v684_v21, %v1588_v44  ;;  %v818_v40 = vadd.f32 %v817_v35, %v755_v20  ;;  %v758_v44 = vmul.f32 %v1606_v58, %v1606_v58  ;;  %1137 = vst [vmem:[#allocation8 + $0xb8] sm:$0xff] %v1073_v37  }
 0x13d   :  { %v686_v23 = vadd.f32 %v685_v39, %v1598_v51  ;;  %v819_v48 = vadd.f32 %v818_v40, %v756_v24 }
 0x13f   :  { %v687_v1 = vadd.f32 %v686_v23, %v1606_v58  ;;  %v820_v28 = vadd.f32 %v819_v48, %v757_v47  ;;  %v761_v58 = vmul.f32 %v1636_v18, %v1636_v18  ;;  %v769_v23 = vmul.f32 %v1590_v45, %v1590_v45 }
 0x141   :  { %v821_v38 = vadd.f32 %v820_v28, %v758_v44  ;;  %v688_v51 = vadd.f32 %v687_v1, %v1618_v15  ;;  %v771_v44 = vmul.f32 %v1608_v59, %v1608_v59 }
 0x143   :  { %v822_v49 = vadd.f32 %v821_v38, %v759_v36  ;;  %v689_v3 = vadd.f32 %v688_v51, %v1626_v53  ;;  %v772_v38 = vmul.f32 %v1622_v25, %v1622_v25  ;;  %v773_v36 = vmul.f32 %v1628_v63, %v1628_v63 }
 0x145   :  { %v823_v57 = vadd.f32 %v822_v49, %v760_v43  ;;  %v690_v4 = vadd.f32 %v689_v3, %v1636_v18 }
 0x147   :  { %v691_v15 = vadd.f32 %v690_v4, %v1534_v62  ;;  %v824_v50 = vadd.f32 %v823_v57, %v761_v58  ;;  %v1726_v62 = vpop.f32.mrf.mxu3  ;;  %v774_v57 = vmul.f32 %v1640_v14, %v1640_v14 }
 0x148   :  { %v1108_v20 = vpack.c.bf16 %v1726_v62, %v1712_v8 }
 0x149   :  { %v692_v17 = vadd.f32 %v691_v15, %v1542_v9  ;;  %v825_v53 = vadd.f32 %v824_v50, %v762_v10  ;;  %v766_v9 = vmul.f32 %v1566_v27, %v1566_v27  ;;  %v776_v50 = vmul.f32 %v1676_v6, %v1676_v6 }
 0x14a   :  { %1144 = vst [vmem:[#allocation8 + $0xf0] sm:$0xff] %v1108_v20  }
 0x14b   :  { %v693_v22 = vadd.f32 %v692_v17, %v1554_v19  ;;  %v826_v18 = vadd.f32 %v825_v53, %v763_v11  ;;  %v767_v19 = vmul.f32 %v1572_v32, %v1572_v32  ;;  %v777_v17 = vmul.f32 %v1692_v31, %v1692_v31 }
 0x14c   :  { %v778_v53 = vmul.f32 %v1568_v29, %v1568_v29 }
 0x14d   :  { %v694_v34 = vadd.f32 %v693_v22, %v1558_v13  ;;  %v827_v12 = vadd.f32 %v826_v18, %v764_v5  ;;  %v768_v13 = vmul.f32 %v1584_v41, %v1584_v41  ;;  %v779_v22 = vmul.f32 %v1574_v33, %v1574_v33 }
 0x14f   :  { %v695_v21 = vadd.f32 %v694_v34, %v1566_v27  ;;  %v828_v35 = vadd.f32 %v827_v12, %v765_v16  ;;  %v1742_v37 = vpop.f32.mrf.mxu3 }
 0x151   :  { %v696_v24 = vadd.f32 %v695_v21, %v1572_v32  ;;  %v829_v39 = vadd.f32 %v828_v35, %v766_v9 }
 0x153   :  { %v830_v40 = vadd.f32 %v829_v39, %v767_v19  ;;  %v697_v47 = vadd.f32 %v696_v24, %v1584_v41 }
 0x155   :  { %v698_v48 = vadd.f32 %v697_v47, %v1590_v45  ;;  %v831_v27 = vadd.f32 %v830_v40, %v768_v13 }
 0x157   :  { %v699_v32 = vadd.f32 %v698_v48, %v1602_v54  ;;  %v832_v1 = vadd.f32 %v831_v27, %v769_v23 }
 0x159   :  { %v700_v28 = vadd.f32 %v699_v32, %v1608_v59  ;;  %v833_v41 = vadd.f32 %v832_v1, %v770_v61  ;;  %v1759_v59 = vpop.f32.mrf.mxu3 }
 0x15a   :  { %v1113_v3 = vpack.c.bf16 %v1759_v59, %v1742_v37 }
 0x15b   :  { %v701_v45 = vadd.f32 %v700_v28, %v1622_v25  ;;  %v834_v51 = vadd.f32 %v833_v41, %v771_v44  ;;  %v789_v44 = vmul.f32 %v1694_v52, %v1694_v52 }
 0x15c   :  { %1145 = vst [vmem:[#allocation8 + $0xf8] sm:$0xff] %v1113_v3   ;;  %v793_v3 = vmul.f32 %v1759_v59, %v1759_v59 }
 0x15d   :  { %v702_v54 = vadd.f32 %v701_v45, %v1628_v63  ;;  %v835_v49 = vadd.f32 %v834_v51, %v772_v38  ;;  %v775_v63 = vmul.f32 %v1656_v30, %v1656_v30  ;;  %876 = dma.vmem_to_hbm [thread:$0]  %s869_s15, 4096, %s871_s18, [#allocation4], %s1339_s13, %s1339_s13, %s1340_s14   ;;  %v790_v38 = vmul.f32 %v1712_v8, %v1712_v8 }
 0x15e   :  { %v791_v51 = vmul.f32 %v1726_v62, %v1726_v62 }
 0x15f   :  { %v836_v25 = vadd.f32 %v835_v49, %v773_v36  ;;  %v703_v43 = vadd.f32 %v702_v54, %v1640_v14  ;;  %v792_v36 = vmul.f32 %v1742_v37, %v1742_v37 }
 0x161   :  { %v837_v4 = vadd.f32 %v836_v25, %v774_v57  ;;  %v704_v58 = vadd.f32 %v703_v43, %v1656_v30 }
 0x163   :  { %v838_v10 = vadd.f32 %v837_v4, %v775_v63  ;;  %v705_v15 = vadd.f32 %v704_v58, %v1676_v6  ;;  %v780_v6 = vmul.f32 %v1586_v42, %v1586_v42 }
 0x165   :  { %v839_v11 = vadd.f32 %v838_v10, %v776_v50  ;;  %v706_v14 = vadd.f32 %v705_v15, %v1692_v31  ;;  %v781_v31 = vmul.f32 %v1592_v46, %v1592_v46 }
 0x167   :  { %v707_v30 = vadd.f32 %v706_v14, %v1568_v29  ;;  %v840_v5 = vadd.f32 %v839_v11, %v777_v17  ;;  %v782_v29 = vmul.f32 %v1604_v55, %v1604_v55 }
 0x169   :  { %v708_v18 = vadd.f32 %v707_v30, %v1574_v33  ;;  %v841_v16 = vadd.f32 %v840_v5, %v778_v53  ;;  %v783_v33 = vmul.f32 %v1610_v60, %v1610_v60 }
 0x16b   :  { %v709_v34 = vadd.f32 %v708_v18, %v1586_v42  ;;  %v842_v12 = vadd.f32 %v841_v16, %v779_v22  ;;  %v784_v42 = vmul.f32 %v1624_v26, %v1624_v26 }
 0x16d   :  { %v710_v20 = vadd.f32 %v709_v34, %v1592_v46  ;;  %v843_v9 = vadd.f32 %v842_v12, %v780_v6  ;;  %v785_v46 = vmul.f32 %v1630_v0, %v1630_v0 }
 0x16f   :  { %v711_v21 = vadd.f32 %v710_v20, %v1604_v55  ;;  %v844_v35 = vadd.f32 %v843_v9, %v781_v31  ;;  %v786_v55 = vmul.f32 %v1642_v56, %v1642_v56 }
 0x171   :  { %v712_v19 = vadd.f32 %v711_v21, %v1610_v60  ;;  %v845_v24 = vadd.f32 %v844_v35, %v782_v29  ;;  %v787_v60 = vmul.f32 %v1658_v2, %v1658_v2 }
 0x173   :  { %v846_v39 = vadd.f32 %v845_v24, %v783_v33  ;;  %v713_v13 = vadd.f32 %v712_v19, %v1624_v26  ;;  %v788_v26 = vmul.f32 %v1678_v7, %v1678_v7 }
 0x175   :  { %v714_v40 = vadd.f32 %v713_v13, %v1630_v0  ;;  %v847_v47 = vadd.f32 %v846_v39, %v784_v42 }
 0x177   :  { %v715_v23 = vadd.f32 %v714_v40, %v1642_v56  ;;  %v848_v48 = vadd.f32 %v847_v47, %v785_v46 }
 0x179   :  { %v716_v27 = vadd.f32 %v715_v23, %v1658_v2  ;;  %v849_v61 = vadd.f32 %v848_v48, %v786_v55 }
 0x17b   :  { %v717_v32 = vadd.f32 %v716_v27, %v1678_v7  ;;  %v850_v1 = vadd.f32 %v849_v61, %v787_v60 }
 0x17d   :  { %v718_v0 = vadd.f32 %v717_v32, %v1694_v52  ;;  %v851_v28 = vadd.f32 %v850_v1, %v788_v26 }
 0x17f   :  { %v852_v56 = vadd.f32 %v851_v28, %v789_v44  ;;  %v719_v41 = vadd.f32 %v718_v0, %v1712_v8 }
 0x181   :  { %v853_v2 = vadd.f32 %v852_v56, %v790_v38  ;;  %v720_v45 = vadd.f32 %v719_v41, %v1726_v62 }
 0x183   :  { %v854_v7 = vadd.f32 %v853_v2, %v791_v51  ;;  %v721_v54 = vadd.f32 %v720_v45, %v1742_v37 }
 0x185   :  { %v855_v52 = vadd.f32 %v854_v7, %v792_v36  ;;  %v722_v49 = vadd.f32 %v721_v54, %v1759_v59 }
 0x187   :  { %v723_v25 = vrot.slane %v722_v49, 4  ;;  %v856_v8 = vadd.f32 %v855_v52, %v793_v3 }
 0x189   :  { %v724_v43 = vadd.f32 %v723_v25, %v722_v49  ;;  %v857_v57 = vrot.slane %v856_v8, 4 }
 0x18b   :  { %v725_v4 = vrot.slane %v724_v43, 2  ;;  %v858_v58 = vadd.f32 %v857_v57, %v856_v8 }
 0x18d   :  { %v726_v63 = vadd.f32 %v725_v4, %v724_v43  ;;  %v859_v62 = vrot.slane %v858_v58, 2 }
 0x18f   :  { %v860_v37 = vadd.f32 %v859_v62, %v858_v58  ;;  %v727_v10 = vrot.slane %v726_v63, 1 }
 0x191   :  { %v728_v59 = vadd.f32 %v727_v10, %v726_v63  ;;  %v861_v15 = vrot.slane %v860_v37, 1 }
 0x193   :  { %729 = vst [vmem:[#allocation9] sm:$0x1] %v728_v59  ;;  %v862_v50 = vadd.f32 %v861_v15, %v860_v37 }
 0x194   :  { %887 = dma.vmem_to_hbm [thread:$0]  %s883_s19, 16, %s885_s22, [#allocation10]  }
 0x195   :  { %863 = vst [vmem:[#allocation11] sm:$0x1] %v862_v50 }
 0x196   :  { %898 = dma.vmem_to_hbm [thread:$0]  %s894_s24, 16, %s896_s27, [#allocation10]  }
 0x197   :  { %1330 = dma.done.wait [#allocation4], 4096  }
 0x198   :  { %1331 = vsyncadd [#allocation4], 4294963200 }
 0x199   :  { %1332 = dma.done.wait [#allocation10], 32  }
 0x19a   :  { %1333 = vsyncadd [#allocation10], 4294967264 }
 0x19b   :  { %911 = vsyncpa [#allocation3], 1 }
 0x19c   :  { %912 = vsyncpa [#allocation6], 1 }
 0x19d   :  { %913 = vsyncpa [#allocation4], 1 }
 0x19e   :  { %914 = vsyncpa [#allocation10], 1 }

</bundles_post_ra>
